<compile_context>
chip_gen: v5e
topology: v5e:2x2
jax: 0.10.0
libtpu: 0.0.40
codegen_flags: <defaults>
</compile_context>

<pallas_src>
import functools

import jax
import jax.numpy as jnp
from jax.experimental import pallas as pl
from jax.experimental.pallas import tpu as pltpu


# ----------------------------- Pallas kernel ------------------------------- #

def _fused_gnn_kernel(gidx_ref,                 # VMEM (2E,1) int32  classifier endpoints (global rows)
                      x_ref,                    # VMEM (N,H)  f32    stacked [user; item] features
                      adj_ref,                  # VMEM (N,N)  bf16   typed block adjacency
                      w1_ref, b1_ref,           # VMEM (2H,2H) bf16 / (2,H) f32
                      w2_ref, b2_ref,           # VMEM (2H,2H) bf16 / (2,H) f32
                      out_ref,                  # VMEM (E,128) f32
                      *, hidden, n_user):
    H = hidden
    N = x_ref.shape[0]
    E2 = gidx_ref.shape[0]
    E = E2 // 2

    adj = adj_ref[...]
    # destination-type mask over the stacked node set (user rows first)
    is_user = jax.lax.broadcasted_iota(jnp.int32, (N, H), 0) < n_user

    def hetero_layer(x, w_ref, b_ref, apply_relu):
        # One neighbor-sum matmul for both node types: the block anti-diagonal
        # adjacency routes item->user ('rev_rates') and user->item ('rates').
        xb = x.astype(jnp.bfloat16)
        agg = jnp.dot(adj, xb, preferred_element_type=jnp.float32)        # (N, H)
        # One projection matmul over the stacked [neighbor-sum | self] operand.
        # W columns: block 0 = user-dst conv (rel_rev | root_rev),
        #            block 1 = item-dst conv (rel_rates | root_rates);
        # neighbor + root terms are summed by the matmul itself.
        z = jnp.concatenate([agg, x], axis=1).astype(jnp.bfloat16)        # (N, 2H)
        ow = jnp.dot(z, w_ref[...], preferred_element_type=jnp.float32)   # (N, 2H)
        b = b_ref[...]                                                    # (2, H)
        out = jnp.where(is_user,
                        ow[:, 0:H] + b[0:1, :],          # user dst: rev_rates conv
                        ow[:, H:2 * H] + b[1:2, :])      # item dst: rates conv
        return jnp.maximum(out, 0.0) if apply_relu else out

    # layer 1 (+ ReLU) then layer 2; all intermediates stay in vregs / VMEM
    x1 = hetero_layer(x_ref[...], w1_ref, b1_ref, True)
    x2 = hetero_layer(x1, w2_ref, b2_ref, False)

    # classifier: both endpoint gathers as ONE one-hot matmul (no scalar loop,
    # no scratch buffers; an out-of-range index yields an all-zero row).
    col = jax.lax.broadcasted_iota(jnp.int32, (E2, N), 1)
    onehot = jnp.where(col == gidx_ref[...], 1.0, 0.0).astype(jnp.bfloat16)   # (2E, N)
    g = jnp.dot(onehot, x2.astype(jnp.bfloat16),
                preferred_element_type=jnp.float32)                           # (2E, H)
    prod = (g[0:E, :] * g[E:E2, :]).astype(jnp.bfloat16)                      # (E, H)
    # lane-dense writeback: reduce over H with a ones-matmul, every lane carries
    # the prediction -> unmasked full-lane (E,128) store; wrapper reads column 0.
    ones_lane = jnp.ones((H, 128), jnp.bfloat16)
    out_ref[...] = jnp.dot(prod, ones_lane, preferred_element_type=jnp.float32)


# ------------------------------- wrappers ----------------------------------- #

def prepare_kernel_args(head_idx, tail_idx, x_user, x_item, adj_iu, adj_ui,
                        w_big1, b1, w_big2, b2):
    """Builds the stacked / packed operands consumed by the fused kernel."""
    NU, H = x_user.shape
    NI = x_item.shape[0]
    N = NU + NI
    E = head_idx.shape[0]

    # Embedding lookup: node_id == arange per node type (HeteroData style), so the
    # lookup is the identity and the tables are used directly as node features.
    # TODO(synk): for non-arange node ids, gather rows here (same one-hot trick).
    x_all = jnp.concatenate([x_user, x_item], axis=0).astype(jnp.float32)   # (N, H)

    # Typed block adjacency over the stacked node set ('add' aggregation):
    #   user rows aggregate item sources (rev_rates), item rows aggregate user sources (rates).
    a_big = jnp.zeros((N, N), jnp.float32)
    a_big = a_big.at[:NU, NU:].set(adj_ui)
    a_big = a_big.at[NU:, :NU].set(adj_iu)
    a_big = a_big.astype(jnp.bfloat16)          # small integer counts -> exact in bf16

    # classifier endpoints as global row indices into the stacked node set
    gidx = jnp.concatenate([head_idx.astype(jnp.int32),
                            NU + tail_idx.astype(jnp.int32)]).reshape(2 * E, 1)

    return (gidx, x_all, a_big,
            w_big1.astype(jnp.bfloat16), b1.astype(jnp.float32),
            w_big2.astype(jnp.bfloat16), b2.astype(jnp.float32))


def fused_gnn_forward(gidx, x_all, a_big, wb1, b1, wb2, b2, *, n_user):
    N, H = x_all.shape
    E = gidx.shape[0] // 2

    vmem = pl.BlockSpec(memory_space=pltpu.MemorySpace.VMEM)
    args = (gidx, x_all, a_big, wb1, b1, wb2, b2)

    flops = 2 * (2 * N * N * H + 2 * N * (2 * H) * (2 * H)) \
            + 2 * (2 * E) * N * H + 2 * E * H * 128
    bytes_accessed = sum(int(a.size) * a.dtype.itemsize for a in args) + E * 128 * 4

    out = pl.pallas_call(
        functools.partial(_fused_gnn_kernel, hidden=H, n_user=n_user),
        out_shape=jax.ShapeDtypeStruct((E, 128), jnp.float32),
        in_specs=[vmem] * 7,
        out_specs=vmem,
        cost_estimate=pl.CostEstimate(flops=flops, transcendentals=0,
                                      bytes_accessed=bytes_accessed),
    )(*args)
    return out[:, 0]


# ------------------------------ references ---------------------------------- #

def kernel_mirror_ref(gidx, x_all, a_big, wb1, b1, wb2, b2, *, n_user):
    """Pure-JAX mirror of the kernel math including the bf16 operand casts."""
    N, H = x_all.shape
    E = gidx.shape[0] // 2
    is_user = jnp.arange(N)[:, None] < n_user

    def layer(x, wb, b, relu):
        agg = jnp.dot(a_big, x.astype(jnp.bfloat16), preferred_element_type=jnp.float32)
        z = jnp.concatenate([agg, x], axis=1).astype(jnp.bfloat16)
        ow = jnp.dot(z, wb, preferred_element_type=jnp.float32)
        out = jnp.where(is_user, ow[:, :H] + b[0:1, :], ow[:, H:] + b[1:2, :])
        return jnp.maximum(out, 0.0) if relu else out

    x1 = layer(x_all, wb1, b1, True)
    x2 = layer(x1, wb2, b2, False)
    onehot = jnp.where(jnp.arange(N)[None, :] == gidx, 1.0, 0.0).astype(jnp.bfloat16)
    g = jnp.dot(onehot, x2.astype(jnp.bfloat16), preferred_element_type=jnp.float32)
    prod = (g[:E] * g[E:]).astype(jnp.bfloat16)
    return jnp.dot(prod, jnp.ones((H,), jnp.bfloat16), preferred_element_type=jnp.float32)


def graphconv_ref(adj, x_src, x_dst, w_rel, b_rel, w_root, apply_relu):
    """PyG GraphConv, full f32, original (adj @ x) @ W associativity."""
    out = (adj @ x_src) @ w_rel + b_rel + x_dst @ w_root
    return jnp.maximum(out, 0.0) if apply_relu else out


# --------------------------------- main ------------------------------------- #

if __name__ == "__main__":
    key = jax.random.PRNGKey(0)
    H = 32                 # hidden_channels
    N_USER, N_ITEM = 16, 24
    N_EDGES = 40           # ("user","rates","item") edges; reverse type is the transpose
    N_LABEL = 8            # edge_label_index width

    ks = jax.random.split(key, 8)

    # torch.nn.Embedding-style tables, N(0,1)
    emb_user = jax.random.normal(ks[0], (N_USER, H), jnp.float32)
    emb_item = jax.random.normal(ks[1], (N_ITEM, H), jnp.float32)

    # edge_index for ("user","rates","item")
    src = jax.random.randint(ks[2], (N_EDGES,), 0, N_USER)
    dst = jax.random.randint(ks[3], (N_EDGES,), 0, N_ITEM)

    # dense adjacency for 'add' aggregation (graph-construction glue in plain JAX)
    adj_item_from_user = jnp.zeros((N_ITEM, N_USER), jnp.float32).at[dst, src].add(1.0)
    adj_user_from_item = adj_item_from_user.T  # ("item","rev_rates","user")

    # GraphConv params per layer / edge type: lin_rel (W, b), lin_root (W, no bias)
    kiter = iter(jax.random.split(ks[4], 12))
    params = {}
    for layer in (1, 2):
        for et in ("rates", "rev_rates"):
            params[(layer, et, "w_rel")] = 0.1 * jax.random.normal(next(kiter), (H, H), jnp.float32)
            params[(layer, et, "b_rel")] = 0.01 * jax.random.normal(next(kiter), (1, H), jnp.float32)
            params[(layer, et, "w_root")] = 0.1 * jax.random.normal(next(kiter), (H, H), jnp.float32)

    # edge_label_index for triplet ("user", "rates", "item")
    head_idx = jax.random.randint(ks[5], (N_LABEL,), 0, N_USER)
    tail_idx = jax.random.randint(ks[6], (N_LABEL,), 0, N_ITEM)

    # pack the 4 per-layer weights into one (2H, 2H) block matrix applied to the
    # stacked [neighbor-sum | self] operand:
    #   rows 0:H multiply the neighbor sum, rows H:2H multiply the self features;
    #   cols 0:H produce the user-destination conv, cols H:2H the item-destination conv.
    def pack_layer(layer):
        w_big = jnp.block([
            [params[(layer, "rev_rates", "w_rel")],  params[(layer, "rates", "w_rel")]],
            [params[(layer, "rev_rates", "w_root")], params[(layer, "rates", "w_root")]],
        ])
        b = jnp.concatenate([params[(layer, "rev_rates", "b_rel")],   # row 0: user dst
                             params[(layer, "rates", "b_rel")]],      # row 1: item dst
                            axis=0)
        return w_big, b

    w_big1, b1 = pack_layer(1)
    w_big2, b2 = pack_layer(2)

    # ---------------- forward pass (single fused pallas_call) ----------------
    kernel_args = prepare_kernel_args(head_idx, tail_idx, emb_user, emb_item,
                                      adj_item_from_user, adj_user_from_item,
                                      w_big1, b1, w_big2, b2)
    pred = fused_gnn_forward(*kernel_args, n_user=N_USER)
    pred = jax.block_until_ready(pred)
    assert pred.shape == (N_LABEL,)

    # ---------------- pure-JAX reference checks ----------------
    # (1) strict functional check: same math + same bf16 cast points as the kernel
    #     (validates routing, packing, gather, reduction) — only accumulation-order
    #     differences remain, so a tight tolerance applies.
    pred_mirror = kernel_mirror_ref(*kernel_args, n_user=N_USER)
    assert jnp.allclose(pred, pred_mirror, atol=5e-2, rtol=1e-2), (pred, pred_mirror)

    # (2) spec check: full-f32 PyG GraphConv formulation from the module spec.
    #     Loose threshold covers bf16 MXU-operand rounding through the layer chain.
    ri1 = graphconv_ref(adj_item_from_user, emb_user, emb_item,
                        params[(1, "rates", "w_rel")], params[(1, "rates", "b_rel")],
                        params[(1, "rates", "w_root")], True)
    ru1 = graphconv_ref(adj_user_from_item, emb_item, emb_user,
                        params[(1, "rev_rates", "w_rel")], params[(1, "rev_rates", "b_rel")],
                        params[(1, "rev_rates", "w_root")], True)
    ri2 = graphconv_ref(adj_item_from_user, ru1, ri1,
                        params[(2, "rates", "w_rel")], params[(2, "rates", "b_rel")],
                        params[(2, "rates", "w_root")], False)
    ru2 = graphconv_ref(adj_user_from_item, ri1, ru1,
                        params[(2, "rev_rates", "w_rel")], params[(2, "rev_rates", "b_rel")],
                        params[(2, "rev_rates", "w_root")], False)
    pred_spec = jnp.sum(jnp.take(ru2, head_idx, axis=0) * jnp.take(ri2, tail_idx, axis=0), axis=-1)

    scale = jnp.maximum(1.0, jnp.max(jnp.abs(pred_spec)))
    max_err = jnp.max(jnp.abs(pred - pred_spec))
    assert max_err <= 0.08 * scale, (pred, pred_spec, max_err, scale)

    print("KERNEL_OK")
</pallas_src>

<mosaic_0001>
module attributes {stable_mosaic.version = 11 : i64} {
  func.func @_fused_gnn_kernel(%arg0: memref<16x1xi32, #tpu.memory_space<vmem>>, %arg1: memref<40x32xf32, #tpu.memory_space<vmem>>, %arg2: memref<40x40xbf16, #tpu.memory_space<vmem>>, %arg3: memref<64x64xbf16, #tpu.memory_space<vmem>>, %arg4: memref<2x32xf32, #tpu.memory_space<vmem>>, %arg5: memref<64x64xbf16, #tpu.memory_space<vmem>>, %arg6: memref<2x32xf32, #tpu.memory_space<vmem>>, %arg7: memref<8x128xf32, #tpu.memory_space<vmem>>) attributes {dimension_semantics = [], scalar_prefetch = 0 : i64, scratch_operands = 0 : i64, tpu.core_type = #tpu.core_type<tc>} {
    %c0 = arith.constant 0 : index
    %c0_0 = arith.constant 0 : index
    %0 = vector.load %arg2[%c0, %c0_0] : memref<40x40xbf16, #tpu.memory_space<vmem>>, vector<40x40xbf16>
    %1 = tpu.iota {dimensions = array<i32: 0>} : vector<40x32xi32>
    %c16_i32 = arith.constant 16 : i32
    %2 = vector.broadcast %c16_i32 : i32 to vector<40x32xi32>
    %3 = arith.cmpi slt, %1, %2 : vector<40x32xi32>
    %c0_1 = arith.constant 0 : index
    %c0_2 = arith.constant 0 : index
    %4 = vector.load %arg1[%c0_1, %c0_2] : memref<40x32xf32, #tpu.memory_space<vmem>>, vector<40x32xf32>
    %5 = arith.truncf %4 : vector<40x32xf32> to vector<40x32xbf16>
    %cst = arith.constant dense<0.000000e+00> : vector<40x32xf32>
    %6 = tpu.matmul %0, %5, %cst {dimension_numbers = #tpu.dot_dimension_numbers<[1], [0], [0], [1], [0, 0, 1, 1], [], []>} : vector<40x40xbf16>, vector<40x32xbf16>, vector<40x32xf32> -> vector<40x32xf32>
    %7 = tpu.concatenate %6, %4 in 1 : vector<40x32xf32>, vector<40x32xf32> -> vector<40x64xf32>
    %8 = arith.truncf %7 : vector<40x64xf32> to vector<40x64xbf16>
    %c0_3 = arith.constant 0 : index
    %c0_4 = arith.constant 0 : index
    %9 = vector.load %arg3[%c0_3, %c0_4] : memref<64x64xbf16, #tpu.memory_space<vmem>>, vector<64x64xbf16>
    %cst_5 = arith.constant dense<0.000000e+00> : vector<40x64xf32>
    %10 = tpu.matmul %8, %9, %cst_5 {dimension_numbers = #tpu.dot_dimension_numbers<[1], [0], [0], [1], [0, 0, 1, 1], [], []>} : vector<40x64xbf16>, vector<64x64xbf16>, vector<40x64xf32> -> vector<40x64xf32>
    %c0_6 = arith.constant 0 : index
    %c0_7 = arith.constant 0 : index
    %11 = vector.load %arg4[%c0_6, %c0_7] : memref<2x32xf32, #tpu.memory_space<vmem>>, vector<2x32xf32>
    %12 = vector.extract_strided_slice %10 {offsets = [0, 0], sizes = [40, 32], strides = [1, 1]} : vector<40x64xf32> to vector<40x32xf32>
    %13 = vector.extract_strided_slice %11 {offsets = [0, 0], sizes = [1, 32], strides = [1, 1]} : vector<2x32xf32> to vector<1x32xf32>
    %14 = vector.broadcast %13 : vector<1x32xf32> to vector<40x32xf32>
    %15 = arith.addf %12, %14 : vector<40x32xf32>
    %16 = vector.extract_strided_slice %10 {offsets = [0, 32], sizes = [40, 32], strides = [1, 1]} : vector<40x64xf32> to vector<40x32xf32>
    %17 = vector.extract_strided_slice %11 {offsets = [1, 0], sizes = [1, 32], strides = [1, 1]} : vector<2x32xf32> to vector<1x32xf32>
    %18 = vector.broadcast %17 : vector<1x32xf32> to vector<40x32xf32>
    %19 = arith.addf %16, %18 : vector<40x32xf32>
    %20 = arith.select %3, %15, %19 : vector<40x32xi1>, vector<40x32xf32>
    %cst_8 = arith.constant 0.000000e+00 : f32
    %21 = vector.broadcast %cst_8 : f32 to vector<40x32xf32>
    %22 = arith.maximumf %20, %21 : vector<40x32xf32>
    %23 = arith.truncf %22 : vector<40x32xf32> to vector<40x32xbf16>
    %cst_9 = arith.constant dense<0.000000e+00> : vector<40x32xf32>
    %24 = tpu.matmul %0, %23, %cst_9 {dimension_numbers = #tpu.dot_dimension_numbers<[1], [0], [0], [1], [0, 0, 1, 1], [], []>} : vector<40x40xbf16>, vector<40x32xbf16>, vector<40x32xf32> -> vector<40x32xf32>
    %25 = tpu.concatenate %24, %22 in 1 : vector<40x32xf32>, vector<40x32xf32> -> vector<40x64xf32>
    %26 = arith.truncf %25 : vector<40x64xf32> to vector<40x64xbf16>
    %c0_10 = arith.constant 0 : index
    %c0_11 = arith.constant 0 : index
    %27 = vector.load %arg5[%c0_10, %c0_11] : memref<64x64xbf16, #tpu.memory_space<vmem>>, vector<64x64xbf16>
    %cst_12 = arith.constant dense<0.000000e+00> : vector<40x64xf32>
    %28 = tpu.matmul %26, %27, %cst_12 {dimension_numbers = #tpu.dot_dimension_numbers<[1], [0], [0], [1], [0, 0, 1, 1], [], []>} : vector<40x64xbf16>, vector<64x64xbf16>, vector<40x64xf32> -> vector<40x64xf32>
    %c0_13 = arith.constant 0 : index
    %c0_14 = arith.constant 0 : index
    %29 = vector.load %arg6[%c0_13, %c0_14] : memref<2x32xf32, #tpu.memory_space<vmem>>, vector<2x32xf32>
    %30 = vector.extract_strided_slice %28 {offsets = [0, 0], sizes = [40, 32], strides = [1, 1]} : vector<40x64xf32> to vector<40x32xf32>
    %31 = vector.extract_strided_slice %29 {offsets = [0, 0], sizes = [1, 32], strides = [1, 1]} : vector<2x32xf32> to vector<1x32xf32>
    %32 = vector.broadcast %31 : vector<1x32xf32> to vector<40x32xf32>
    %33 = arith.addf %30, %32 : vector<40x32xf32>
    %34 = vector.extract_strided_slice %28 {offsets = [0, 32], sizes = [40, 32], strides = [1, 1]} : vector<40x64xf32> to vector<40x32xf32>
    %35 = vector.extract_strided_slice %29 {offsets = [1, 0], sizes = [1, 32], strides = [1, 1]} : vector<2x32xf32> to vector<1x32xf32>
    %36 = vector.broadcast %35 : vector<1x32xf32> to vector<40x32xf32>
    %37 = arith.addf %34, %36 : vector<40x32xf32>
    %38 = arith.select %3, %33, %37 : vector<40x32xi1>, vector<40x32xf32>
    %39 = tpu.iota {dimensions = array<i32: 1>} : vector<16x40xi32>
    %c0_15 = arith.constant 0 : index
    %c0_16 = arith.constant 0 : index
    %40 = vector.load %arg0[%c0_15, %c0_16] : memref<16x1xi32, #tpu.memory_space<vmem>>, vector<16x1xi32>
    %41 = vector.broadcast %40 : vector<16x1xi32> to vector<16x40xi32>
    %42 = arith.cmpi eq, %39, %41 : vector<16x40xi32>
    %cst_17 = arith.constant 1.000000e+00 : f32
    %cst_18 = arith.constant 0.000000e+00 : f32
    %43 = vector.broadcast %cst_17 : f32 to vector<16x40xf32>
    %44 = vector.broadcast %cst_18 : f32 to vector<16x40xf32>
    %45 = arith.select %42, %43, %44 : vector<16x40xi1>, vector<16x40xf32>
    %46 = arith.truncf %45 : vector<16x40xf32> to vector<16x40xbf16>
    %47 = arith.truncf %38 : vector<40x32xf32> to vector<40x32xbf16>
    %cst_19 = arith.constant dense<0.000000e+00> : vector<16x32xf32>
    %48 = tpu.matmul %46, %47, %cst_19 {dimension_numbers = #tpu.dot_dimension_numbers<[1], [0], [0], [1], [0, 0, 1, 1], [], []>} : vector<16x40xbf16>, vector<40x32xbf16>, vector<16x32xf32> -> vector<16x32xf32>
    %49 = vector.extract_strided_slice %48 {offsets = [0, 0], sizes = [8, 32], strides = [1, 1]} : vector<16x32xf32> to vector<8x32xf32>
    %50 = vector.extract_strided_slice %48 {offsets = [8, 0], sizes = [8, 32], strides = [1, 1]} : vector<16x32xf32> to vector<8x32xf32>
    %51 = arith.mulf %49, %50 : vector<8x32xf32>
    %52 = arith.truncf %51 : vector<8x32xf32> to vector<8x32xbf16>
    %cst_20 = arith.constant 1.000000e+00 : bf16
    %53 = vector.broadcast %cst_20 : bf16 to vector<32x128xbf16>
    %cst_21 = arith.constant dense<0.000000e+00> : vector<8x128xf32>
    %54 = tpu.matmul %52, %53, %cst_21 {dimension_numbers = #tpu.dot_dimension_numbers<[1], [0], [0], [1], [0, 0, 1, 1], [], []>} : vector<8x32xbf16>, vector<32x128xbf16>, vector<8x128xf32> -> vector<8x128xf32>
    %c0_22 = arith.constant 0 : index
    %c0_23 = arith.constant 0 : index
    %55 = vector.load %arg7[%c0_22, %c0_23] : memref<8x128xf32, #tpu.memory_space<vmem>>, vector<8x128xf32>
    tpu.vector_store %arg7[%c0_22, %c0_23], %54 {strides = array<i32>} : memref<8x128xf32, #tpu.memory_space<vmem>>, vector<8x128xf32>,
    return
  }
}

</mosaic_0001>

<bundles_post_ra>
// kernel: tpu_custom_call.1
= control target key start
LH: loop header
LB: loop body
LE: loop exit
PB: predicated region body
PF: predicated region fallthrough
CT: control target
= control target key end

     0   :  { %vm76_vm0 = vcmask 1043456   ;;  %s608_s11 = smov 32   ;;  %s768_s0 = inlined_call_operand.vmem [shape: s32[16,1], index: 0, kind: input, shape index: {}]   ;;  %s769_s1 = inlined_call_operand.vmem [shape: f32[40,32], index: 1, kind: input, shape index: {}]   ;;  %s770_s2 = inlined_call_operand.vmem [shape: bf16[40,40], index: 2, kind: input, shape index: {}]   ;;  %s771_s3 = inlined_call_operand.vmem [shape: bf16[64,64], index: 3, kind: input, shape index: {}]   ;;  %s772_s4 = inlined_call_operand.vmem [shape: f32[2,32], index: 4, kind: input, shape index: {}]   ;;  %s773_s5 = inlined_call_operand.vmem [shape: bf16[64,64], index: 5, kind: input, shape index: {}]   ;;  %s774_s6 = inlined_call_operand.vmem [shape: f32[2,32], index: 6, kind: input, shape index: {}]   ;;  %s775_s7 = inlined_call_operand.hbm [shape: f32[8,128], index: 7, kind: output, shape index: {}]  }
   0x1   :  { %v49_v0 = vld [vmem:[%s769_s1 + $0x20] sm:$0xff]  ;;  %v47_v1 = vld [vmem:[%s769_s1 + $0x10] sm:$0xff]  ;;  %v48_v3 = vld [vmem:[%s769_s1 + $0x18] sm:$0xff] }
   0x2   :  { %v52_v2 = vpack.c.bf16 %v49_v0, %v49_v0  ;;  %v45_v4 = vld [vmem:[%s769_s1] sm:$0xff]  ;;  %v46_v5 = vld [vmem:[%s769_s1 + $0x8] sm:$0xff]  ;;  %116 = vrot.lane.b32.xlu1 %v49_v0, %s608_s11 }
   0x3   :  { %v550_v6 = vpack.i.bf16 %v46_v5, %v45_v4 }
   0x4   :  { %12 = vsyncpa [#allocation3], 0  ;;  %v78_v7 = vsel %vm76_vm0, %v52_v2, 0  ;;  %v51_v8 = vpack.c.bf16 %v48_v3, %v47_v1  ;;  %v555_v9 = vpack.i.bf16 %v48_v3, %v47_v1  ;;  %v50_v10 = vpack.c.bf16 %v46_v5, %v45_v4  ;;  %v675_v11 = vld [vmem:[%s770_s2] sm:$0xff]  ;;  %v539_v12 = vld [vmem:[%s771_s3 + $0x18] sm:$0xff]  ;;  %s471_s16 = sshll.u32 %s775_s7, 4  ;;  %s472_s16 = int_to_ptr.hbm [resolvable:$true] %s471_s16 }
   0x5   :  { %85 = vmatpush.bf16.msra.mxu0 %v78_v7  ;;  %551 = vrot.lane.b32.xlu0 %v550_v6, %s608_s11  ;;  %vm66_vm1 = vcmask 326656   ;;  %v686_v13 = vld [vmem:[%s770_s2 + $0x8] sm:$0xff]  ;;  %v33_v14 = vld [vmem:[%s770_s2 + $0x10] sm:$0xf]  ;;  %v536_v19 = vld [vmem:[%s771_s3] sm:$0xff]  ;;  %vm123_vm2 = vcmask 261120  }
   0x6   :  { %178 = vmatpush.bf16.msra.mxu1 %v539_v12  ;;  %v62_v15 = vunpack.c.l.b16 %v33_v14  ;;  %v538_v17 = vld [vmem:[%s771_s3 + $0x10] sm:$0xff]  ;;  %v537_v18 = vld [vmem:[%s771_s3 + $0x8] sm:$0xff]  ;;  %v197_v21 = vld [vmem:[%s772_s4] sm:$0x3]  ;;  %vm164_vm3 = vcmask 523264   ;;  %s609_s3 = smov 96  }
   0x7   :  { %v204_v22 = vperm.slane %v197_v21, 1  ;;  %v198_v44 = vperm.slane %v197_v21, 0 }
   0x8   :  { %v693_v16 = vpack.c.b16 %v62_v15, %v62_v15 }
   0x9   :  { %86 = vmatpush.bf16.msra.mxu0 %v51_v8  ;;  %v543_v8 = vld [vmem:[%s773_s5 + $0x18] sm:$0xff] }
   0xa   :  { %179 = vmatpush.bf16.msra.mxu1 %v538_v17  ;;  %206 = vrot.lane.b32.xlu1 %v204_v22, %s608_s11 }
   0xb   :  { %346 = vmatpush.bf16.msra.mxu3 %v543_v8 }
   0xd   :  { %87 = vmatpush.bf16.msra.mxu0 %v50_v10  ;;  %556 = vrot.lane.b32.xlu0 %v555_v9, %s608_s11  ;;  %v542_v9 = vld [vmem:[%s773_s5 + $0x10] sm:$0xff]  ;;  %v541_v10 = vld [vmem:[%s773_s5 + $0x8] sm:$0xff] }
   0xe   :  { %180 = vmatpush.bf16.msra.mxu1 %v537_v18 }
   0xf   :  { %347 = vmatpush.bf16.msra.mxu3 %v542_v9 }
  0x10   :  { %488 = vmatmul.msk.bf16.vlgmr.msra.gmra.mxu0 %vm66_vm1, %v675_v11 }
  0x12   :  { %181 = vmatpush.bf16.msra.mxu1 %v536_v19 }
  0x13   :  { %348 = vmatpush.bf16.msra.mxu3 %v541_v10 }
  0x20   :  { %489 = vmatmul.msk.bf16.gmra.mxu0 %vm66_vm1, %v686_v13 }
  0x30   :  { %490 = vmatmul.msk.bf16.gmra.mxu0 %vm66_vm1, %v693_v16 }
  0x74   :  { %v117_v39 = vpop.permute.xlu1 %116 }
  0x77   :  { %v552_v23 = vpop.permute.xlu0 %551 }
  0x78   :  { %v554_v24 = vunpack.i.h.bf16 %v552_v23  ;;  %v553_v25 = vunpack.i.l.bf16 %v552_v23 }
  0x7c   :  { %v207_v54 = vpop.permute.xlu1 %206 }
  0x7f   :  { %v557_v31 = vpop.permute.xlu0 %556 }
  0x80   :  { %v559_v32 = vunpack.i.h.bf16 %v557_v31  ;;  %v558_v33 = vunpack.i.l.bf16 %v557_v31 }
  0x8d   :  { %v89_v20 = vpop.f32.mrf.mxu0 }
  0x8e   :  { %v124_v27 = vsel %vm123_vm2, %v89_v20, %v553_v25  ;;  %v365_v20 = vld [vmem:[%s774_s6] sm:$0x3] }
  0x8f   :  { %v372_v21 = vperm.slane %v365_v20, 1 }
  0x95   :  { %v91_v26 = vpop.f32.mrf.mxu0 }
  0x96   :  { %v125_v28 = vsel %vm123_vm2, %v91_v26, %v554_v24 }
  0x97   :  { %v129_v29 = vpack.c.bf16 %v125_v28, %v124_v27 }
  0x99   :  { %507 = vmatmul.msk.bf16.vlgmr.msra.gmra.mxu1 %vm164_vm3, %v129_v29 }
  0x9d   :  { %v94_v30 = vpop.f32.mrf.mxu0 }
  0x9e   :  { %v126_v35 = vsel %vm123_vm2, %v94_v30, %v558_v33 }
  0xa5   :  { %v96_v34 = vpop.f32.mrf.mxu0 }
  0xa6   :  { %v127_v36 = vsel %vm123_vm2, %v96_v34, %v559_v32 }
  0xa7   :  { %v130_v37 = vpack.c.bf16 %v127_v36, %v126_v35  ;;  %v366_v36 = vperm.slane %v365_v20, 0 }
  0xa9   :  { %508 = vmatmul.msk.bf16.gmra.mxu1 %vm164_vm3, %v130_v37 }
  0xad   :  { %v99_v38 = vpop.f32.mrf.mxu0 }
  0xae   :  { %v128_v40 = vsel %vm123_vm2, %v99_v38, %v117_v39  ;;  %v409_v38 = vld [vmem:[%s768_s0] sm:$0xff] }
  0xaf   :  { %v131_v41 = vpack.c.bf16 %v128_v40, %v128_v40 }
  0xb5   :  { %v101_v42 = vpop.f32.mrf.mxu0 }
  0xb9   :  { %509 = vmatmul.msk.bf16.gmra.mxu1 %vm164_vm3, %v131_v41  ;;  %v610_v41 = vmov 0  }
  0xba   :  { %581 = vset.pattern.permute.xlu1 %v610_v41  ;;  %580 = vset.pattern.permute.xlu0 %v610_v41 }
 0x116   :  { %v183_v43 = vpop.f32.mrf.mxu1 }
 0x117   :  { %v199_v45 = vadd.f32 %v198_v44, %v183_v43 }
 0x119   :  { %v239_v48 = vmax.f32 %v199_v45, 0.0 }
 0x11e   :  { %v185_v46 = vpop.f32.mrf.mxu1 }
 0x11f   :  { %v200_v47 = vadd.f32 %v198_v44, %v185_v46 }
 0x121   :  { %v240_v49 = vmax.f32 %v200_v47, 0.0 }
 0x123   :  { %v565_v50 = vpack.i.bf16 %v240_v49, %v239_v48  ;;  %v244_v51 = vpack.c.bf16 %v240_v49, %v239_v48 }
 0x125   :  { %566 = vrot.lane.b32.xlu0 %v565_v50, %s608_s11 }
 0x126   :  { %v188_v52 = vpop.f32.mrf.mxu1 }
 0x127   :  { %v211_v56 = vadd.f32 %v207_v54, %v188_v52  ;;  %v410_v52 = vld [vmem:[%s768_s0 + $0x8] sm:$0xff]  ;;  %s613_s0 = smov [#allocation2]  }
 0x128   :  { %s469_s1 = sshll.u32 %s613_s0, 4  ;;  %s470_s1 = int_to_ptr.vmem [resolvable:$true] %s469_s1 }
 0x12d   :  { %374 = vrot.lane.b32.xlu0 %v372_v21, %s608_s11 }
 0x12e   :  { %v190_v53 = vpop.f32.mrf.mxu1 }
 0x12f   :  { %v212_v60 = vadd.f32 %v207_v54, %v190_v53  ;;  %v611_v53 = vmov 1065369472  }
 0x135   :  { %412 = vperm.xlu0 %580, %v409_v38  }
 0x136   :  { %v193_v55 = vpop.f32.mrf.mxu1 }
 0x137   :  { %v213_v57 = vadd.f32 %v207_v54, %v193_v55  ;;  %v407_v54 = vlaneseq }
 0x139   :  { %v560_v58 = vpack.i.bf16 %v211_v56, %v213_v57 }
 0x13b   :  { %561 = vrot.lane.b32.xlu2 %v560_v58, %s609_s3  ;;  %v408_v58 = vand.u32 127, %v407_v54 }
 0x13e   :  { %v195_v59 = vpop.f32.mrf.mxu1 }
 0x143   :  { %225 = vrot.lane.b32.xlu2 %v212_v60, %s609_s3 }
 0x195   :  { %v562_v61 = vpop.permute.xlu2 %561 }
 0x196   :  { %v563_v62 = vunpack.i.l.bf16 %v562_v61  ;;  %v564_v0 = vunpack.i.h.bf16 %v562_v61 }
 0x198   :  { %v243_v63 = vmax.f32 %v563_v62, 0.0  ;;  %v241_v4 = vmax.f32 %v564_v0, 0.0 }
 0x19a   :  { %286 = vrot.lane.b32.xlu2 %v243_v63, %s608_s11  ;;  %v246_v1 = vpack.c.bf16 %v243_v63, %v243_v63 }
 0x19c   :  { %v248_v2 = vsel %vm76_vm0, %v246_v1, 0  ;;  %v612_v1 = vmov 0.0  }
 0x19d   :  { %v226_v3 = vpop.permute.xlu2 %225  ;;  %255 = vmatpush.bf16.msra.mxu2 %v248_v2 }
 0x19e   :  { %v242_v5 = vmax.f32 %v226_v3, 0.0 }
 0x1a0   :  { %v570_v6 = vpack.i.bf16 %v242_v5, %v241_v4  ;;  %v245_v7 = vpack.c.bf16 %v242_v5, %v241_v4 }
 0x1a2   :  { %571 = vrot.lane.b32.xlu1 %v570_v6, %s608_s11  ;;  %256 = vmatpush.bf16.msra.mxu2 %v245_v7 }
 0x1a6   :  { %257 = vmatpush.bf16.msra.mxu2 %v244_v51 }
 0x1a9   :  { %510 = vmatmul.msk.bf16.vlgmr.msra.gmra.mxu2 %vm66_vm1, %v675_v11  ;;  %v540_v11 = vld [vmem:[%s773_s5] sm:$0xff] }
 0x1aa   :  { %349 = vmatpush.bf16.msra.mxu3 %v540_v11  ;;  %456 = vmatpush.bf16.msrb.mxu2 %v611_v53 }
 0x1ae   :  { %457 = vmatpush.bf16.msrb.mxu2 %v611_v53 }
 0x1b9   :  { %511 = vmatmul.msk.bf16.gmra.mxu2 %vm66_vm1, %v686_v13  ;;  %v567_v13 = vpop.permute.xlu0 %566 }
 0x1ba   :  { %v569_v14 = vunpack.i.h.bf16 %v567_v13  ;;  %v568_v15 = vunpack.i.l.bf16 %v567_v13 }
 0x1c1   :  { %v375_v44 = vpop.permute.xlu0 %374 }
 0x1c9   :  { %512 = vmatmul.msk.bf16.gmra.mxu2 %vm66_vm1, %v693_v16  ;;  %v413_v60 = vpop.permute.xlu0 %412 }
 0x1ca   :  { %vm417_vm4 = vcmp.eq.s32.totalorder %v408_v58, %v413_v60 }
 0x1cb   :  { %v419_v2 = vsel %vm417_vm4, 1.0, %v612_v1 }
 0x1f4   :  { %v287_v31 = vpop.permute.xlu2 %286 }
 0x214   :  { %v572_v23 = vpop.permute.xlu1 %571 }
 0x215   :  { %v574_v24 = vunpack.i.h.bf16 %v572_v23  ;;  %v573_v25 = vunpack.i.l.bf16 %v572_v23 }
 0x22c   :  { %v259_v12 = vpop.f32.mrf.mxu2 }
 0x22d   :  { %v293_v17 = vsel %vm123_vm2, %v259_v12, %v568_v15 }
 0x234   :  { %v261_v16 = vpop.f32.mrf.mxu2 }
 0x235   :  { %v294_v18 = vsel %vm123_vm2, %v261_v16, %v569_v14 }
 0x236   :  { %v298_v19 = vpack.c.bf16 %v294_v18, %v293_v17 }
 0x238   :  { %529 = vmatmul.msk.bf16.vlgmr.msra.gmra.mxu3 %vm164_vm3, %v298_v19 }
 0x23c   :  { %v264_v22 = vpop.f32.mrf.mxu2 }
 0x23d   :  { %v295_v27 = vsel %vm123_vm2, %v264_v22, %v573_v25 }
 0x244   :  { %v266_v26 = vpop.f32.mrf.mxu2 }
 0x245   :  { %v296_v28 = vsel %vm123_vm2, %v266_v26, %v574_v24 }
 0x246   :  { %v299_v29 = vpack.c.bf16 %v296_v28, %v295_v27 }
 0x248   :  { %530 = vmatmul.msk.bf16.gmra.mxu3 %vm164_vm3, %v299_v29 }
 0x24c   :  { %v269_v30 = vpop.f32.mrf.mxu2 }
 0x24d   :  { %v297_v32 = vsel %vm123_vm2, %v269_v30, %v287_v31 }
 0x24e   :  { %v300_v34 = vpack.c.bf16 %v297_v32, %v297_v32 }
 0x254   :  { %v271_v33 = vpop.f32.mrf.mxu2 }
 0x258   :  { %531 = vmatmul.msk.bf16.gmra.mxu3 %vm164_vm3, %v300_v34 }
 0x2bb   :  { %v351_v35 = vpop.f32.mrf.mxu3 }
 0x2bc   :  { %v367_v39 = vadd.f32 %v366_v36, %v351_v35 }
 0x2c3   :  { %v353_v37 = vpop.f32.mrf.mxu3 }
 0x2c4   :  { %v368_v40 = vadd.f32 %v366_v36, %v353_v37 }
 0x2c6   :  { %v422_v42 = vpack.c.bf16 %v368_v40, %v367_v39 }
 0x2cb   :  { %v356_v43 = vpop.f32.mrf.mxu3 }
 0x2cc   :  { %v379_v48 = vadd.f32 %v375_v44, %v356_v43 }
 0x2d3   :  { %v358_v45 = vpop.f32.mrf.mxu3 }
 0x2d4   :  { %v380_v46 = vadd.f32 %v375_v44, %v358_v45 }
 0x2d6   :  { %393 = vrot.lane.b32.xlu2 %v380_v46, %s609_s3 }
 0x2db   :  { %v361_v47 = vpop.f32.mrf.mxu3 }
 0x2dc   :  { %v381_v49 = vadd.f32 %v375_v44, %v361_v47 }
 0x2de   :  { %v575_v50 = vpack.i.bf16 %v379_v48, %v381_v49 }
 0x2e0   :  { %576 = vrot.lane.b32.xlu1 %v575_v50, %s609_s3 }
 0x2e3   :  { %v363_v51 = vpop.f32.mrf.mxu3 }
 0x2e8   :  { %415 = vperm.xlu1 %581, %v410_v52  }
 0x330   :  { %v394_v62 = vpop.permute.xlu2 %393 }
 0x352   :  { %v577_v55 = vpop.permute.xlu1 %576 }
 0x353   :  { %v578_v56 = vunpack.i.l.bf16 %v577_v55  ;;  %v579_v59 = vunpack.i.h.bf16 %v577_v55 }
 0x355   :  { %v424_v57 = vpack.c.bf16 %v578_v56, %v578_v56  ;;  %v423_v63 = vpack.c.bf16 %v394_v62, %v579_v59 }
 0x357   :  { %v429_v61 = vsel %vm76_vm0, %v424_v57, 0 }
 0x358   :  { %436 = vmatpush.bf16.msrb.mxu0 %v429_v61 }
 0x35a   :  { %v416_v0 = vpop.permute.xlu1 %415 }
 0x35b   :  { %vm418_vm5 = vcmp.eq.s32.totalorder %v408_v58, %v416_v0 }
 0x35c   :  { %437 = vmatpush.bf16.msrb.mxu0 %v423_v63  ;;  %v420_v3 = vsel %vm418_vm5, 1.0, %v612_v1 }
 0x35d   :  { %v421_v4 = vpack.c.bf16 %v420_v3, %v419_v2 }
 0x360   :  { %438 = vmatpush.bf16.msrb.mxu0 %v422_v42 }
 0x363   :  { %532 = vmatmul.msk.bf16.vlgmr.msrb.gmra.mxu0 %vm66_vm1, %v421_v4 }
 0x3e0   :  { %v440_v5 = vpop.f32.mrf.mxu0 }
 0x3e8   :  { %v442_v6 = vpop.f32.mrf.mxu0 }
 0x3e9   :  { %v445_v7 = vmul.f32 %v442_v6, %v440_v5 }
 0x3eb   :  { %v446_v8 = vpack.c.bf16 %v445_v7, %v445_v7 }
 0x3ed   :  { %533 = vmatmul.msk.bf16.vlgmr.msrb.gmra.mxu2 %vm123_vm2, %v446_v8 }
 0x470   :  { %v459_v9 = vpop.f32.mrf.mxu2 }
 0x471   :  { %463 = vst [vmem:[#allocation2] sm:$0xff] %v459_v9 }
 0x472   :  { %474 = dma.vmem_to_hbm [thread:$0]  %s470_s1, 128, %s472_s16, [#allocation3]  }
 0x478   :  { %v461_v10 = vpop.f32.mrf.mxu2 }
 0x479   :  { %606 = dma.done.wait [#allocation3], 128  }
 0x47a   :  { %607 = vsyncadd [#allocation3], 4294967168 }
 0x47b   :  { %479 = vsyncpa [#allocation3], 1 }

</bundles_post_ra>
